<compile_context>
chip_gen: v7x
topology: tpu7x:2x2x1
jax: 0.10.0
libtpu: 0.0.40
codegen_flags: <defaults>
</compile_context>

<pallas_src>
import functools

import jax
import jax.numpy as jnp
from jax.experimental import pallas as pl
from jax.experimental.pallas import tpu as pltpu

EPS = 1e-5  # nn.LayerNorm default eps


def _split_dot(a, m):
    """a @ m keeping ~f32 precision regardless of how the MXU emulates f32.

    `m` contains only 0/1 (exact in bf16), so only `a` needs the hi/lo split.
    Cost is two small matmuls on an otherwise-idle MXU (kernel is HBM-bound).
    """
    a_hi = a.astype(jnp.bfloat16).astype(jnp.float32)
    a_lo = a - a_hi
    return (jnp.dot(a_hi, m, preferred_element_type=jnp.float32)
            + jnp.dot(a_lo, m, preferred_element_type=jnp.float32))


def _packed_kernel(x_ref, gamma_ref, mseg_ref, o_ref, *, channels, seq_len, pack):
    """Lane-dense path: `pack` original rows folded into the 128-lane axis.

    x_ref:     (TB, Lp, KC) tile; KC = pack * channels = 128, Lp = L // pack
    gamma_ref: (1, KC)  (gamma tiled `pack` times along lanes)
    mseg_ref:  (KC, KC) block-diagonal ones -> segmented sum + broadcast on MXU
    """
    inv_c = jnp.float32(1.0 / channels)
    inv_l = jnp.float32(1.0 / seq_len)
    gamma = gamma_ref[...].astype(jnp.float32)
    mseg = mseg_ref[...]

    for b in range(x_ref.shape[0]):                       # TB: small, static
        x = x_ref[b].astype(jnp.float32)                  # (Lp, KC)
        # per-original-row channel moments (segmented, broadcast back by mseg)
        mean = _split_dot(x, mseg) * inv_c
        xm = x - mean                                     # centered (robust var)
        var = _split_dot(xm * xm, mseg) * inv_c
        n = xm * jax.lax.rsqrt(var + EPS)                 # EUP rsqrt

        # sequence (torch dim=1) mean: sublane reduce over Lp packed rows,
        # then exact fold across the `pack` lane segments via XLU rolls
        # (lanes s*C + c all hold original channel c).
        col = jnp.sum(n, axis=0, keepdims=True)           # (1, KC)
        tot = col
        for s in range(1, pack):
            tot = tot + pltpu.roll(col, shift=s * channels, axis=1)
        seq_mean = tot * inv_l

        # beta cancels exactly in x_hat - mean_L(x_hat); gamma applied once.
        o_ref[b] = (gamma * (n - seq_mean)).astype(o_ref.dtype)


def _plain_kernel(x_ref, gamma_ref, o_ref, *, channels, seq_len):
    """General path (C >= 128 or not foldable): natural (TB, L, C) tiles."""
    inv_c = jnp.float32(1.0 / channels)
    inv_l = jnp.float32(1.0 / seq_len)
    gamma = gamma_ref[...].astype(jnp.float32)            # (1, C)
    for b in range(x_ref.shape[0]):
        x = x_ref[b].astype(jnp.float32)                  # (L, C)
        mean = jnp.sum(x, axis=-1, keepdims=True) * inv_c
        xm = x - mean
        var = jnp.sum(xm * xm, axis=-1, keepdims=True) * inv_c
        n = xm * jax.lax.rsqrt(var + EPS)
        seq_mean = jnp.sum(n, axis=0, keepdims=True) * inv_l
        o_ref[b] = (gamma * (n - seq_mean)).astype(o_ref.dtype)


def _vmem_limit(needed_bytes):
    """Generation-aware scoped-VMEM cap: ~3/4 of physical per-TC VMEM."""
    try:
        info = pltpu.get_tpu_info()
        cap = int(getattr(info, "vmem_capacity_bytes", 128 << 20))
    except Exception:  # pragma: no cover - conservative fallback
        cap = 128 << 20
    return int(min(max(needed_bytes, 8 << 20), (cap * 3) // 4))


def my_layernorm(x, gamma, beta=None):
    """x: (B, L, C); gamma, beta: (C,). Returns (B, L, C).

    `beta` is accepted for interface parity with nn.LayerNorm but cancels
    mathematically in x_hat - mean_L(x_hat), so it is never sent to the kernel.
    """
    del beta  # cancels exactly
    B, L, C = x.shape
    itemsize = jnp.dtype(x.dtype).itemsize

    # ---- lane-dense repacking decision (C < 128 and foldable) ---------------
    pack = 1
    if C < 128 and 128 % C == 0 and L % (128 // C) == 0:
        pack = 128 // C
    packed = pack > 1
    Lp, KC = L // pack, pack * C

    # ---- batch TB elements per grid step (amortize ~0.35 us/step) -----------
    # keep >= 2 grid steps when B >= 2 so v7x megacore uses both TensorCores.
    per_batch = L * C * itemsize
    TB = 1
    for tb in range(1, B + 1):
        if B % tb:
            continue
        if B >= 2 and B // tb < 2:
            continue
        if tb * per_batch <= (2 << 20):
            TB = tb
    grid = (B // TB,)

    # ---- scoped-VMEM budget ---------------------------------------------------
    tile_bytes = TB * L * C * itemsize
    f32_work = 6 * TB * L * C * 4                       # x(+hi/lo), xm, n, slack
    const_bytes = (KC * KC * 4 + KC * 4) if packed else C * 4
    needed = 4 * tile_bytes + f32_work + const_bytes + (2 << 20)
    cparams = pltpu.CompilerParams(
        dimension_semantics=("parallel",),
        vmem_limit_bytes=_vmem_limit(needed),
    )

    if packed:
        xp = x.reshape(B, Lp, KC)                       # wrapper-side repack (free reshape)
        gamma_p = jnp.tile(gamma.reshape(1, C), (1, pack)).astype(jnp.float32)
        lane = jnp.arange(KC, dtype=jnp.int32)
        mseg = (lane[:, None] // C == lane[None, :] // C).astype(jnp.float32)
        kernel = functools.partial(
            _packed_kernel, channels=C, seq_len=L, pack=pack)
        out = pl.pallas_call(
            kernel,
            out_shape=jax.ShapeDtypeStruct((B, Lp, KC), x.dtype),
            grid_spec=pltpu.PrefetchScalarGridSpec(
                num_scalar_prefetch=0,
                grid=grid,
                in_specs=[
                    pl.BlockSpec((TB, Lp, KC), lambda b: (b, 0, 0)),
                    pl.BlockSpec((1, KC), lambda b: (0, 0)),     # resident
                    pl.BlockSpec((KC, KC), lambda b: (0, 0)),    # resident
                ],
                out_specs=pl.BlockSpec((TB, Lp, KC), lambda b: (b, 0, 0)),
            ),
            compiler_params=cparams,
        )(xp, gamma_p, mseg)
        return out.reshape(B, L, C)

    gamma2d = gamma.reshape(1, C).astype(jnp.float32)
    kernel = functools.partial(_plain_kernel, channels=C, seq_len=L)
    return pl.pallas_call(
        kernel,
        out_shape=jax.ShapeDtypeStruct((B, L, C), x.dtype),
        grid_spec=pltpu.PrefetchScalarGridSpec(
            num_scalar_prefetch=0,
            grid=grid,
            in_specs=[
                pl.BlockSpec((TB, L, C), lambda b: (b, 0, 0)),
                pl.BlockSpec((1, C), lambda b: (0, 0)),          # resident
            ],
            out_specs=pl.BlockSpec((TB, L, C), lambda b: (b, 0, 0)),
        ),
        compiler_params=cparams,
    )(x, gamma2d)


def my_layernorm_ref(x, gamma, beta):
    """Pure-JAX reference matching the PyTorch module."""
    xf = x.astype(jnp.float32)
    mean = jnp.mean(xf, axis=-1, keepdims=True)
    var = jnp.mean((xf - mean) ** 2, axis=-1, keepdims=True)
    x_hat = (xf - mean) / jnp.sqrt(var + EPS)
    x_hat = x_hat * gamma + beta
    bias = jnp.mean(x_hat, axis=1, keepdims=True)
    return (x_hat - bias).astype(x.dtype)


if __name__ == "__main__":
    key = jax.random.PRNGKey(0)
    kx, kg, kb, kx2 = jax.random.split(key, 4)

    # --- packed (lane-dense) path: C = 32 < 128 (4 rows folded into lanes) ---
    B, L, C = 2, 8, 32
    x = jax.random.normal(kx, (B, L, C), dtype=jnp.float32)
    gamma = jnp.ones((C,), jnp.float32) + 0.1 * jax.random.normal(kg, (C,), jnp.float32)
    beta = 0.1 * jax.random.normal(kb, (C,), jnp.float32)

    out = jax.block_until_ready(my_layernorm(x, gamma, beta))
    ref = my_layernorm_ref(x, gamma, beta)
    assert out.shape == (B, L, C)
    assert jnp.allclose(out, ref, atol=1e-4, rtol=1e-4), "packed-path mismatch"

    # --- plain path: C = 128 (no folding) ------------------------------------
    B2, L2, C2 = 2, 8, 128
    x2 = jax.random.normal(kx2, (B2, L2, C2), dtype=jnp.float32)
    gamma2 = jnp.ones((C2,), jnp.float32)
    beta2 = jnp.zeros((C2,), jnp.float32)

    out2 = jax.block_until_ready(my_layernorm(x2, gamma2, beta2))
    ref2 = my_layernorm_ref(x2, gamma2, beta2)
    assert jnp.allclose(out2, ref2, atol=1e-4, rtol=1e-4), "plain-path mismatch"

    print("KERNEL_OK")
</pallas_src>

<mosaic_0001>
module attributes {stable_mosaic.version = 11 : i64} {
  func.func @_packed_kernel(%arg0: i32, %arg1: memref<1x2x128xf32, #tpu.memory_space<vmem>>, %arg2: memref<1x128xf32, #tpu.memory_space<vmem>>, %arg3: memref<128x128xf32, #tpu.memory_space<vmem>>, %arg4: memref<1x2x128xf32, #tpu.memory_space<vmem>>) attributes {dimension_semantics = [#tpu.dimension_semantics<parallel>], iteration_bounds = array<i64: 2>, scalar_prefetch = 0 : i64, scratch_operands = 0 : i64, tpu.core_type = #tpu.core_type<tc>, window_params = [{transform_indices = @transform_0, window_bounds = array<i64: 1, 2, 128>}, {pipeline_mode = #tpu.pipeline_mode<synchronous>, transform_indices = @transform_1, window_bounds = array<i64: 1, 128>}, {pipeline_mode = #tpu.pipeline_mode<synchronous>, transform_indices = @transform_2, window_bounds = array<i64: 128, 128>}, {transform_indices = @transform_3, window_bounds = array<i64: 1, 2, 128>}]} {
    %c0 = arith.constant 0 : index
    %c0_0 = arith.constant 0 : index
    %0 = vector.load %arg2[%c0, %c0_0] : memref<1x128xf32, #tpu.memory_space<vmem>>, vector<1x128xf32>
    %c0_1 = arith.constant 0 : index
    %c0_2 = arith.constant 0 : index
    %1 = vector.load %arg3[%c0_1, %c0_2] : memref<128x128xf32, #tpu.memory_space<vmem>>, vector<128x128xf32>
    %c0_3 = arith.constant 0 : index
    %c0_4 = arith.constant 0 : index
    %c0_5 = arith.constant 0 : index
    %2 = vector.load %arg1[%c0_3, %c0_4, %c0_5] : memref<1x2x128xf32, #tpu.memory_space<vmem>>, vector<1x2x128xf32>
    %3 = vector.shape_cast %2 : vector<1x2x128xf32> to vector<2x128xf32>
    %4 = arith.truncf %3 : vector<2x128xf32> to vector<2x128xbf16>
    %5 = arith.extf %4 : vector<2x128xbf16> to vector<2x128xf32>
    %6 = arith.subf %3, %5 : vector<2x128xf32>
    %cst = arith.constant dense<0.000000e+00> : vector<2x128xf32>
    %7 = tpu.matmul %5, %1, %cst {dimension_numbers = #tpu.dot_dimension_numbers<[1], [0], [0], [1], [0, 0, 1, 1], [], []>} : vector<2x128xf32>, vector<128x128xf32>, vector<2x128xf32> -> vector<2x128xf32>
    %cst_6 = arith.constant dense<0.000000e+00> : vector<2x128xf32>
    %8 = tpu.matmul %6, %1, %cst_6 {dimension_numbers = #tpu.dot_dimension_numbers<[1], [0], [0], [1], [0, 0, 1, 1], [], []>} : vector<2x128xf32>, vector<128x128xf32>, vector<2x128xf32> -> vector<2x128xf32>
    %9 = arith.addf %7, %8 : vector<2x128xf32>
    %cst_7 = arith.constant 3.125000e-02 : f32
    %10 = vector.broadcast %cst_7 : f32 to vector<2x128xf32>
    %11 = arith.mulf %9, %10 : vector<2x128xf32>
    %12 = arith.subf %3, %11 : vector<2x128xf32>
    %13 = arith.mulf %12, %12 : vector<2x128xf32>
    %14 = arith.truncf %13 : vector<2x128xf32> to vector<2x128xbf16>
    %15 = arith.extf %14 : vector<2x128xbf16> to vector<2x128xf32>
    %16 = arith.subf %13, %15 : vector<2x128xf32>
    %cst_8 = arith.constant dense<0.000000e+00> : vector<2x128xf32>
    %17 = tpu.matmul %15, %1, %cst_8 {dimension_numbers = #tpu.dot_dimension_numbers<[1], [0], [0], [1], [0, 0, 1, 1], [], []>} : vector<2x128xf32>, vector<128x128xf32>, vector<2x128xf32> -> vector<2x128xf32>
    %cst_9 = arith.constant dense<0.000000e+00> : vector<2x128xf32>
    %18 = tpu.matmul %16, %1, %cst_9 {dimension_numbers = #tpu.dot_dimension_numbers<[1], [0], [0], [1], [0, 0, 1, 1], [], []>} : vector<2x128xf32>, vector<128x128xf32>, vector<2x128xf32> -> vector<2x128xf32>
    %19 = arith.addf %17, %18 : vector<2x128xf32>
    %cst_10 = arith.constant 3.125000e-02 : f32
    %20 = vector.broadcast %cst_10 : f32 to vector<2x128xf32>
    %21 = arith.mulf %19, %20 : vector<2x128xf32>
    %cst_11 = arith.constant 9.99999974E-6 : f32
    %22 = vector.broadcast %cst_11 : f32 to vector<2x128xf32>
    %23 = arith.addf %21, %22 : vector<2x128xf32>
    %24 = math.rsqrt %23 : vector<2x128xf32>
    %25 = arith.mulf %12, %24 : vector<2x128xf32>
    %cst_12 = arith.constant dense<0.000000e+00> : vector<128xf32>
    %26 = vector.multi_reduction <add>, %25, %cst_12 [0] : vector<2x128xf32> to vector<128xf32>
    %27 = vector.shape_cast %26 : vector<128xf32> to vector<1x128xf32>
    %c32_i32 = arith.constant 32 : i32
    %28 = tpu.dynamic_rotate %27 by %c32_i32 dim 1 : vector<1x128xf32>, i32 -> vector<1x128xf32>
    %29 = arith.addf %27, %28 : vector<1x128xf32>
    %c64_i32 = arith.constant 64 : i32
    %30 = tpu.dynamic_rotate %27 by %c64_i32 dim 1 : vector<1x128xf32>, i32 -> vector<1x128xf32>
    %31 = arith.addf %29, %30 : vector<1x128xf32>
    %c96_i32 = arith.constant 96 : i32
    %32 = tpu.dynamic_rotate %27 by %c96_i32 dim 1 : vector<1x128xf32>, i32 -> vector<1x128xf32>
    %33 = arith.addf %31, %32 : vector<1x128xf32>
    %cst_13 = arith.constant 1.250000e-01 : f32
    %34 = vector.broadcast %cst_13 : f32 to vector<1x128xf32>
    %35 = arith.mulf %33, %34 : vector<1x128xf32>
    %36 = vector.broadcast %35 : vector<1x128xf32> to vector<2x128xf32>
    %37 = arith.subf %25, %36 : vector<2x128xf32>
    %38 = vector.broadcast %0 : vector<1x128xf32> to vector<2x128xf32>
    %39 = arith.mulf %38, %37 : vector<2x128xf32>
    %c0_14 = arith.constant 0 : index
    %c0_15 = arith.constant 0 : index
    %c0_16 = arith.constant 0 : index
    %40 = vector.load %arg4[%c0_14, %c0_15, %c0_16] : memref<1x2x128xf32, #tpu.memory_space<vmem>>, vector<1x2x128xf32>
    %41 = vector.shape_cast %40 : vector<1x2x128xf32> to vector<2x128xf32>
    %42 = vector.shape_cast %39 : vector<2x128xf32> to vector<1x2x128xf32>
    tpu.vector_store %arg4[%c0_14, %c0_15, %c0_16], %42 {strides = array<i32>} : memref<1x2x128xf32, #tpu.memory_space<vmem>>, vector<1x2x128xf32>,
    return
  }
  func.func @transform_0(%arg0: i32) -> (i32, i32, i32) {
    %c0_i32 = arith.constant 0 : i32
    %c0_i32_0 = arith.constant 0 : i32
    %c0_i32_1 = arith.constant 0 : i32
    return %arg0, %c0_i32, %c0_i32_0 : i32, i32, i32
  }
  func.func @transform_1(%arg0: i32) -> (i32, i32) {
    %c0_i32 = arith.constant 0 : i32
    %c0_i32_0 = arith.constant 0 : i32
    %c0_i32_1 = arith.constant 0 : i32
    return %c0_i32, %c0_i32_0 : i32, i32
  }
  func.func @transform_2(%arg0: i32) -> (i32, i32) {
    %c0_i32 = arith.constant 0 : i32
    %c0_i32_0 = arith.constant 0 : i32
    %c0_i32_1 = arith.constant 0 : i32
    return %c0_i32, %c0_i32_0 : i32, i32
  }
  func.func @transform_3(%arg0: i32) -> (i32, i32, i32) {
    %c0_i32 = arith.constant 0 : i32
    %c0_i32_0 = arith.constant 0 : i32
    %c0_i32_1 = arith.constant 0 : i32
    return %arg0, %c0_i32, %c0_i32_0 : i32, i32, i32
  }
}

</mosaic_0001>

<bundles_post_ra>
// kernel: tpu_custom_call.1
= control target key start
LH: loop header
LB: loop body
LE: loop exit
PB: predicated region body
PF: predicated region fallthrough
CT: control target
= control target key end

     0   :  { %8 = vsyncpa [#allocation3], 0  ;;  %s1470_s0 = inlined_call_operand.hbm [shape: f32[2,2,128], index: 0, kind: input, shape index: {}]   ;;  %s1471_s1 = inlined_call_operand.vmem [shape: f32[1,128], index: 1, kind: input, shape index: {}]   ;;  %s1472_s2 = inlined_call_operand.hbm [shape: f32[128,128], index: 2, kind: input, shape index: {}]   ;;  %s1473_s3 = inlined_call_operand.hbm [shape: f32[2,2,128], index: 3, kind: output, shape index: {}]  }
   0x1   :  { %10 = vsyncpa [#allocation3 + $0x1], 0 }
   0x2   :  { %11 = vsyncpa [#allocation6], 0 }
   0x3   :  { %12 = vsyncpa [#allocation4], 0 }
   0x4   :  { %14 = vsyncpa [#allocation4 + $0x1], 0  ;;  %s1188_s12 = smov 0   ;;  %s1190_s13 = smov 0  }
   0x5   :  { %s1192_s14 = smov 0   ;;  %s1194_s15 = smov 0  }
   0x6 LB: > { %s1209_s16 = sadd.s32 4294967295, %s1155_s15   ;;  %s637_s17 = sadd.s32 4294967294, %s1155_s15   ;;  %s1155_s15 = sphi %s1194_s15, %s1493_s15   ;;  %s1151_s14 = sphi %s1192_s14, %s1492_s14   ;;  %s1147_s13 = sphi %s1190_s13, %s1491_s13   ;;  %s1143_s12 = sphi %s1188_s12, %s1490_s12  }
   0x7   : > { %p40_p0 = scmp.ne.s32.totalorder %s1147_s13, %s1143_s12  ;;  %p1474_p1 = scmp.eq.s32.totalorder %s1209_s16, 0 }
   0x8   : > { %p112_p3 = scmp.eq.s32.totalorder %s637_s17, 1  ;;  %p638_p5 = scmp.ge.s32.totalorder %s1155_s15, 1 }
   0x9   : > { %p1218_p4 = por %p1474_p1, %p40_p0  ;;  %p119_p7 = scmp.lt.s32.totalorder %s1155_s15, 3 }
   0xa   : > { %p1223_p6 = por %p112_p3, %p40_p0  ;;  %s1157_s21 = smov [#allocation5]  }
   0xb   : > { %s1477_s18 = scalar_select %p1218_p4, 1, 0 }
   0xc   : > { %s1478_s19 = scalar_select %p1223_p6, 1, 0 }
   0xd   : > { %p1228_p8 = pnand %p638_p5, %p119_p7  ;;  %s134_s22 = sshll.u32 %s1157_s21, 4  ;;  %s1232_s22 = int_to_ptr.vmem [resolvable:$true] %s134_s22 }
   0xe   : > { %s1244_s24 = sadd.s32 1, %s1155_s15   ;;  %s27_s25 = sadd.s32 1, %s1151_s14 }
   0xf   : > { %s1479_s20 = scalar_select %p1228_p8, 1, 0 }
  0x10   : > { %p968_p9 = pneg %p1228_p8  ;;  %s24_s26 = ssub.s32 %s1155_s15, %s1244_s24 }
  0x11   : > { %s1027_s29 = scalar_lea.hbm %s1472_s2, 2048 }
  0x12   : > { %p1239_p11 = pnand %p968_p9, %p1474_p1  ;;  %p1028_p12 = scmp.ne.s32.totalorder %s1472_s2, %s1027_s29 }
  0x13   : > { %p1034_p5 = scmp.lt.u32.totalorder %s1027_s29, %s1472_s2 }
  0x14   : > { %p1029_p13 = pneg %p1239_p11 }
  0x16   : > { %p1030_p0 = pnand %p1029_p13, %p1028_p12 }
  0x18   : > { %p1031_p3 = pneg %p1030_p0 }
  0x1a   : > { %p1036_p7 = pnand %p1034_p5, %p1031_p3 }
  0x1c   : > { %1039 = shalt.err (!%p1036_p7)
}
  0x1d   : > { %s1040_s7 = scalar_lea.vmem %s1232_s22, 2048  ;;  %p1048_p2 = scmp.lt.s32.totalorder %s1232_s22, %s1232_s22 }
  0x1e   : > { %p1041_p9 = scmp.ne.s32.totalorder %s1232_s22, %s1040_s7  ;;  %p1049_p6 = scmp.lt.s32.totalorder %s1040_s7, %s1040_s7 }
  0x20   : > { %p1043_p10 = pnand %p1041_p9, %p1029_p13  ;;  %p1050_p4 = por %p1049_p6, %p1048_p2 }
  0x22   : > { %p1044_p1 = pneg %p1043_p10 }
  0x24   : > { %p1051_p8 = pnand %p1050_p4, %p1044_p1 }
  0x26   : > { %1054 = shalt.err (!%p1051_p8)
}
  0x27   : > { %s1158_s8 = smov 128   ;;  %s1159_s9 = smov 8  }
  0x28   : > { %971 = dma.hbm_to_vmem [thread:$0]  (!%p1239_p11), %s1472_s2, 2048, %s1232_s22, [#allocation6], %s1158_s8, %s1158_s8, %s1159_s9  }
  0x29   : > { %p25_p2 = scmp.eq.s32.totalorder %s24_s26, 0  ;;  %p34_p1 = scmp.ne.s32.totalorder %s1151_s14, %s1147_s13 }
  0x2a   : > { %p35_p4 = scmp.eq.s32.totalorder %s1155_s15, 0  ;;  %p981_p6 = scmp.lt.s32.totalorder %s1155_s15, 2 }
  0x2b   : > { %s1275_s17 = scalar_select %p25_p2, %s1151_s14, %s27_s25  }
  0x2c   : > { %p36_p8 = por %p35_p4, %p34_p1  ;;  %p1481_p10 = scmp.eq.s32.totalorder %s1209_s16, 1 }
  0x2d   : > { %s148_s27 = sand.u32 1, %s1151_s14   ;;  %s642_s28 = sshll.u32 %s1155_s15, 5 }
  0x2e   : > { %p1279_p12 = por %p1481_p10, %p34_p1  ;;  %s641_s29 = sshll.u32 %s148_s27, 1 }
  0x2f   : > { %s1288_s4 = scalar_lea.hbm %s1470_s0, %s642_s28  ;;  %s152_s22 = scalar_lea.vmem [#allocation2], %s641_s29 }
  0x30   : > { %s159_s25 = sshll.u32 %s152_s22, 4  ;;  %p1290_p11 = pnand %p981_p6, %p36_p8  ;;  %s1294_s25 = int_to_ptr.vmem [resolvable:$true] %s159_s25 }
  0x31   : > { %s149_s5 = scalar_lea.sflag [#allocation3], %s148_s27  ;;  %s1055_s6 = scalar_lea.hbm %s1288_s4, 32 }
  0x32   : > { %p1056_p13 = scmp.ne.s32.totalorder %s1288_s4, %s1055_s6  ;;  %p1057_p0 = pneg %p1290_p11 }
  0x33   : > { %s1060_s9 = scalar_lea.hbm %s1470_s0, 64  ;;  %p1061_p7 = scmp.lt.u32.totalorder %s1288_s4, %s1470_s0 }
  0x34   : > { %p1058_p3 = pnand %p1057_p0, %p1056_p13  ;;  %p1062_p9 = scmp.lt.u32.totalorder %s1060_s9, %s1055_s6 }
  0x35   : > { %p1064_p1 = scmp.lt.u32.totalorder %s1055_s6, %s1288_s4 }
  0x36   : > { %p1059_p5 = pneg %p1058_p3  ;;  %p1063_p2 = por %p1062_p9, %p1061_p7 }
  0x38   : > { %p1065_p4 = por %p1064_p1, %p1063_p2 }
  0x3a   : > { %p1066_p6 = pnand %p1065_p4, %p1059_p5 }
  0x3c   : > { %1069 = shalt.err (!%p1066_p6)
}
  0x3d   : > { %s1070_s27 = scalar_lea.vmem %s1294_s25, 32  ;;  %s1160_s28 = smov [#allocation2]  }
  0x3e   : > { %p1071_p8 = scmp.ne.s32.totalorder %s1294_s25, %s1070_s27  ;;  %s1075_s29 = sshll.u32 %s1160_s28, 4  ;;  %s1076_s29 = int_to_ptr.vmem [resolvable:$false] %s1075_s29 }
  0x3f   : > { %s1077_s23 = scalar_lea.vmem %s1076_s29, 64  ;;  %p1078_p3 = scmp.lt.s32.totalorder %s1294_s25, %s1076_s29 }
  0x40   : > { %p1073_p10 = pnand %p1071_p8, %p1057_p0  ;;  %p1079_p7 = scmp.lt.s32.totalorder %s1077_s23, %s1070_s27 }
  0x42   : > { %p1074_p13 = pneg %p1073_p10  ;;  %p1080_p9 = por %p1079_p7, %p1078_p3 }
  0x44   : > { %p1081_p2 = pnand %p1080_p9, %p1074_p13 }
  0x46   : > { %1084 = shalt.err (!%p1081_p2)
}
  0x47   : > { %975 = dma.hbm_to_vmem [thread:$0]  (!%p1290_p11), %s1288_s4, 32, %s1294_s25, %s149_s5  }
  0x48   : > { %p1484_p5 = scmp.ne.s32.totalorder %s1479_s20, 0 }
  0x49   : > { %s1324_s30 = sand.u32 (!%p1484_p5), 1, %s1147_s13   ;;  %p1485_p0 = scmp.ne.s32.totalorder (!%p1484_p5), %s1477_s18, 0 }
  0x4a   : > { %168 = sbr.rel (%p1484_p5) target bundleno = 794 (0x31a), region = 32  ;;  %s644_s22 = sshll.u32 (!%p1484_p5), %s1324_s30, 1 }
  0x4b   : > { %s171_s6 = scalar_lea.sflag (!%p1484_p5), [#allocation3], %s1324_s30  ;;  %s1330_s7 = scalar_lea.vmem (!%p1484_p5), [#allocation2], %s644_s22 }
  0x51   : > { %1130 = dma.done.wait (%p1485_p0), %s171_s6, 32  }
  0x52   : > { %1132 = vsyncadd (%p1485_p0), %s171_s6, 4294967264  ;;  %p1486_p11 = scmp.eq.s32.totalorder %s1209_s16, 0 }
  0x54   : > { %1134 = dma.done.wait (%p1486_p11), [#allocation6], 2048   ;;  %p1487_p1 = pmov %p1486_p11 }
  0x55   : > { %v1161_v0 = vmov 0.0|0.0   ;;  %vm1162_vm0 = vmmov 0   ;;  %v1163_v1 = vmov 0.0   ;;  %v202_v2 = vld [vmem:[#allocation5] sm:$0xff]  ;;  %v203_v3 = vld [vmem:[#allocation5 + $0x8] sm:$0xff]  ;;  %v204_v4 = vld [vmem:[#allocation5 + $0x10] sm:$0xff]  ;;  %v530_v51 = vlaneseq }
  0x56   : > { %1136 = vsyncadd (%p1487_p1), [#allocation6], 4294965248  ;;  %860 = vmatprep.subr.bf16.mxu0 %v1161_v0  ;;  %752 = vmatprep.mubr.msk.f32.mxu0 %vm1162_vm0, %v1163_v1  ;;  %v1346_v5 = vpack.c.bf16 %v203_v3, %v202_v2  ;;  %v205_v6 = vld [vmem:[#allocation5 + $0x18] sm:$0xff]  ;;  %v206_v8 = vld [vmem:[#allocation5 + $0x20] sm:$0xff]  ;;  %vm512_vm1 = vcmask 1041408   ;;  %s1164_s18 = smov 96  }
  0x57   : > { %908 = vmatprep.subr.bf16.mxu1 %v1161_v0  ;;  %822 = vmatprep.mubr.msk.f32.mxu1 %vm1162_vm0, %v1163_v1  ;;  %v1349_v7 = vpack.c.bf16 %v205_v6, %v204_v4  ;;  %v207_v9 = vld [vmem:[#allocation5 + $0x28] sm:$0xff]  ;;  %v208_v11 = vld [vmem:[#allocation5 + $0x30] sm:$0xff]  ;;  %v209_v12 = vld [vmem:[#allocation5 + $0x38] sm:$0xff]  ;;  %s1165_s20 = smov 32   ;;  %s1166_s4 = smov 64   ;;  %v531_v54 = vshrl.u32 %v530_v51, 7 }
  0x58   : > { %862 = vmatpush3.bf16.msra.mxu0 %v1346_v5  ;;  %910 = vmatpush3.bf16.msra.mxu1 %v1346_v5  ;;  %v1355_v10 = vpack.c.bf16 %v207_v9, %v206_v8  ;;  %v1361_v13 = vpack.c.bf16 %v209_v12, %v208_v11  ;;  %v210_v14 = vld [vmem:[#allocation5 + $0x40] sm:$0xff]  ;;  %v211_v15 = vld [vmem:[#allocation5 + $0x48] sm:$0xff]  ;;  %v212_v17 = vld [vmem:[#allocation5 + $0x50] sm:$0xff]  ;;  %s649_s5 = sshll.u32 %s1209_s16, 5  ;;  %s200_s8 = scalar_lea.vmem [#allocation7], %s644_s22 }
  0x59   : > { %863 = vmatprep.subr.bf16.mxu0 %v1161_v0  ;;  %911 = vmatprep.subr.bf16.mxu1 %v1161_v0  ;;  %v1367_v16 = vpack.c.bf16 %v211_v15, %v210_v14  ;;  %v213_v18 = vld [vmem:[#allocation5 + $0x58] sm:$0xff]  ;;  %v214_v21 = vld [vmem:[#allocation5 + $0x60] sm:$0xff]  ;;  %v215_v22 = vld [vmem:[#allocation5 + $0x68] sm:$0xff]  ;;  %v532_v58 = vsub.s32 0, %v531_v54  ;;  %s557_s9 = sshll.u32 %s200_s8, 4  ;;  %s1426_s27 = scalar_lea.hbm %s1473_s3, %s649_s5  ;;  %s1428_s9 = int_to_ptr.vmem [resolvable:$true] %s557_s9 }
  0x5a   : > { %v1373_v19 = vpack.c.bf16 %v213_v18, %v212_v17  ;;  %v218_v20 = vld [vmem:[%s1330_s7] sm:$0x3]  ;;  %v879_v24 = vpack.c.bf16 %v215_v22, %v214_v21  ;;  %v216_v25 = vld [vmem:[#allocation5 + $0x70] sm:$0xff]  ;;  %s544_s28 = scalar_lea.sflag [#allocation4], %s1324_s30  ;;  %s1085_s29 = scalar_lea.vmem %s1428_s9, 32 }
  0x5b   : > { %v219_v23 = vpack.c.bf16 %v218_v20, %v218_v20  ;;  %v217_v26 = vld [vmem:[#allocation5 + $0x78] sm:$0xff]  ;;  %p1086_p4 = scmp.ne.s32.totalorder %s1428_s9, %s1085_s29  ;;  %s1167_s16 = smov [#allocation7]  }
  0x5c   : > { %865 = vmatpush3.bf16.msra.mxu0 %v1349_v7  ;;  %913 = vmatpush3.bf16.msra.mxu1 %v1349_v7  ;;  %v882_v28 = vpack.c.bf16 %v217_v26, %v216_v25  ;;  %v647_v62 = vld [vmem:[%s1471_s1] ss:$0 sm:$0xff]  ;;  %s1089_s23 = sshll.u32 %s1167_s16, 4  ;;  %s1090_s23 = int_to_ptr.vmem [resolvable:$false] %s1089_s23 }
  0x5d   : > { %866 = vmatprep.subr.bf16.mxu0 %v1161_v0  ;;  %914 = vmatprep.subr.bf16.mxu1 %v1161_v0  ;;  %v220_v27 = vunpack.c.l.bf16 %v219_v23  ;;  %p1087_p6 = pnand %p1086_p4, %p1279_p12  ;;  %s1091_s22 = scalar_lea.vmem %s1090_s23, 64 }
  0x5e   : > { %p1092_p10 = scmp.lt.s32.totalorder %s1428_s9, %s1090_s23  ;;  %p1093_p13 = scmp.lt.s32.totalorder %s1091_s22, %s1085_s29 }
  0x5f   : > { %v221_v29 = vsub.f32 %v218_v20, %v220_v27  ;;  %p1088_p8 = pneg %p1087_p6 }
  0x60   : > { %868 = vmatpush3.bf16.msra.mxu0 %v1355_v10  ;;  %916 = vmatpush3.bf16.msra.mxu1 %v1355_v10  ;;  %p1094_p3 = por %p1093_p13, %p1092_p10 }
  0x61   : > { %869 = vmatprep.subr.bf16.mxu0 %v1161_v0  ;;  %917 = vmatprep.subr.bf16.mxu1 %v1161_v0 }
  0x62   : > { %p1095_p7 = pnand %p1094_p3, %p1088_p8 }
  0x64   : > { %871 = vmatpush3.bf16.msra.mxu0 %v1361_v13  ;;  %919 = vmatpush3.bf16.msra.mxu1 %v1361_v13 }
  0x65   : > { %872 = vmatprep.subr.bf16.mxu0 %v1161_v0  ;;  %920 = vmatprep.subr.bf16.mxu1 %v1161_v0 }
  0x68   : > { %874 = vmatpush3.bf16.msra.mxu0 %v1367_v16  ;;  %922 = vmatpush3.bf16.msra.mxu1 %v1367_v16 }
  0x69   : > { %875 = vmatprep.subr.bf16.mxu0 %v1161_v0  ;;  %923 = vmatprep.subr.bf16.mxu1 %v1161_v0 }
  0x6c   : > { %877 = vmatpush3.bf16.msra.mxu0 %v1373_v19  ;;  %925 = vmatpush3.bf16.msra.mxu1 %v1373_v19 }
  0x6d   : > { %878 = vmatprep.subr.bf16.mxu0 %v1161_v0  ;;  %926 = vmatprep.subr.bf16.mxu1 %v1161_v0 }
  0x70   : > { %880 = vmatpush3.bf16.msra.mxu0 %v879_v24  ;;  %928 = vmatpush3.bf16.msra.mxu1 %v879_v24 }
  0x71   : > { %881 = vmatprep.subr.bf16.mxu0 %v1161_v0  ;;  %929 = vmatprep.subr.bf16.mxu1 %v1161_v0 }
  0x74   : > { %883 = vmatpush3.bf16.msra.mxu0 %v882_v28  ;;  %931 = vmatpush3.bf16.msra.mxu1 %v882_v28 }
  0x75   : > { %884 = vmatprep.subr.bf16.mxu0 %v1161_v0  ;;  %932 = vmatprep.subr.bf16.mxu1 %v1161_v0 }
  0x77   : > { %753 = vmatmul.mubr.f32.vlgmr.msra.gmra.mrb[0].mxu0 %v221_v29 }
  0x78   : > { %886 = vmatpush3.bf16.msra.mxu0 %v1346_v5  ;;  %787 = vmatprep.mubr.msk.f32.mxu0 %vm1162_vm0, %v1163_v1 }
  0x79   : > { %887 = vmatprep.subr.bf16.mxu0 %v1161_v0 }
  0x7c   : > { %889 = vmatpush3.bf16.msra.mxu0 %v1349_v7 }
  0x7d   : > { %890 = vmatprep.subr.bf16.mxu0 %v1161_v0 }
  0x80   : > { %892 = vmatpush3.bf16.msra.mxu0 %v1355_v10 }
  0x81   : > { %893 = vmatprep.subr.bf16.mxu0 %v1161_v0 }
  0x84   : > { %895 = vmatpush3.bf16.msra.mxu0 %v1361_v13 }
  0x85   : > { %896 = vmatprep.subr.bf16.mxu0 %v1161_v0 }
  0x88   : > { %898 = vmatpush3.bf16.msra.mxu0 %v1367_v16 }
  0x89   : > { %899 = vmatprep.subr.bf16.mxu0 %v1161_v0 }
  0x8c   : > { %901 = vmatpush3.bf16.msra.mxu0 %v1373_v19 }
  0x8d   : > { %902 = vmatprep.subr.bf16.mxu0 %v1161_v0 }
  0x90   : > { %904 = vmatpush3.bf16.msra.mxu0 %v879_v24 }
  0x91   : > { %905 = vmatprep.subr.bf16.mxu0 %v1161_v0 }
  0x94   : > { %907 = vmatpush3.bf16.msra.mxu0 %v882_v28 }
  0x97   : > { %788 = vmatmul.mubr.f32.vlgmr.msra.gmra.mrb[0].mxu0 %v220_v27 }
 0x16a   : > { %v358_v30 = vpop.f32.mrb[0].mxu0 }
 0x16b   : > { %v362_v31 = vmul.f32 0.03125, %v358_v30  ;;  %v789_v32 = vpop.f32.mrb[1].mxu0 }
 0x16d   : > { %v363_v33 = vsub.f32 %v218_v20, %v362_v31 }
 0x16f   : > { %v364_v34 = vmul.f32 %v363_v33, %v363_v33 }
 0x171   : > { %v365_v35 = vpack.c.bf16 %v364_v34, %v364_v34 }
 0x173   : > { %v366_v36 = vunpack.c.l.bf16 %v365_v35 }
 0x175   : > { %v367_v37 = vsub.f32 %v364_v34, %v366_v36 }
 0x177   : > { %823 = vmatmul.mubr.f32.vlgmr.msra.gmra.mrb[0].mxu1 %v367_v37 }
 0x178   : > { %934 = vmatpush3.bf16.msra.mxu1 %v1346_v5  ;;  %857 = vmatprep.mubr.msk.f32.mxu1 %vm1162_vm0, %v1163_v1 }
 0x179   : > { %935 = vmatprep.subr.bf16.mxu1 %v1161_v0 }
 0x17c   : > { %937 = vmatpush3.bf16.msra.mxu1 %v1349_v7 }
 0x17d   : > { %938 = vmatprep.subr.bf16.mxu1 %v1161_v0 }
 0x180   : > { %940 = vmatpush3.bf16.msra.mxu1 %v1355_v10 }
 0x181   : > { %941 = vmatprep.subr.bf16.mxu1 %v1161_v0 }
 0x184   : > { %943 = vmatpush3.bf16.msra.mxu1 %v1361_v13 }
 0x185   : > { %944 = vmatprep.subr.bf16.mxu1 %v1161_v0 }
 0x188   : > { %946 = vmatpush3.bf16.msra.mxu1 %v1367_v16 }
 0x189   : > { %947 = vmatprep.subr.bf16.mxu1 %v1161_v0 }
 0x18c   : > { %949 = vmatpush3.bf16.msra.mxu1 %v1373_v19 }
 0x18d   : > { %950 = vmatprep.subr.bf16.mxu1 %v1161_v0 }
 0x190   : > { %952 = vmatpush3.bf16.msra.mxu1 %v879_v24 }
 0x191   : > { %953 = vmatprep.subr.bf16.mxu1 %v1161_v0 }
 0x194   : > { %955 = vmatpush3.bf16.msra.mxu1 %v882_v28 }
 0x197   : > { %858 = vmatmul.mubr.f32.vlgmr.msra.gmra.mrb[0].mxu1 %v366_v36 }
 0x26a   : > { %v504_v38 = vpop.f32.mrb[0].mxu1 }
 0x26b   : > { %v508_v39 = vmul.f32 0.03125, %v504_v38  ;;  %v859_v40 = vpop.f32.mrb[1].mxu1 }
 0x26d   : > { %v509_v41 = vadd.f32 1e-05, %v508_v39 }
 0x26f   : > { %1025 = vrsqrt.f32 %v509_v41 }
 0x279   : > { %v1026_v42 = vpop.eup %1025 }
 0x27a   : > { %v511_v43 = vmul.f32 %v1026_v42, %v363_v33 }
 0x27c   : > { %v513_v44 = vsel %vm512_vm1, %v511_v43, 0.0 }
 0x27d   : > { %v514_v45 = vrot.slane %v513_v44, 4 }
 0x27f   : > { %v515_v46 = vadd.f32 %v514_v45, %v513_v44 }
 0x281   : > { %v516_v47 = vrot.slane %v515_v46, 2 }
 0x283   : > { %v517_v48 = vadd.f32 %v516_v47, %v515_v46 }
 0x285   : > { %v518_v49 = vrot.slane %v517_v48, 1 }
 0x287   : > { %v519_v50 = vadd.f32 %v518_v49, %v517_v48 }
 0x289   : > { %526 = vrot.lane.b32.xlu1 %v519_v50, %s1164_s18  ;;  %520 = vrot.lane.b32.xlu0 %v519_v50, %s1165_s20 }
 0x28d   : > { %523 = vrot.lane.b32.xlu0 %v519_v50, %s1166_s4 }
 0x2fb   : > { %v521_v52 = vpop.permute.xlu0 %520  ;;  %v527_v57 = vpop.permute.xlu1 %526 }
 0x2fc   : > { %v522_v53 = vadd.f32 %v521_v52, %v519_v50 }
 0x2ff   : > { %v524_v55 = vpop.permute.xlu0 %523 }
 0x300   : > { %v525_v56 = vadd.f32 %v524_v55, %v522_v53 }
 0x302   : > { %v528_v59 = vadd.f32 %v527_v57, %v525_v56 }
 0x304   : > { %v529_v60 = vmul.f32 0.125, %v528_v59 }
 0x306   : > { %v533_v61 = vrot.slane %v529_v60, %v532_v58 }
 0x308   : > { %v534_v63 = vsub.f32 %v511_v43, %v533_v61 }
 0x30a   : > { %v541_v0 = vmul.f32 %v647_v62, %v534_v63 }
 0x30c   : > { %542 = vst [vmem:[%s200_s8] sm:$0x3] %v541_v0 }
 0x30d   : > { %1098 = shalt.err (!%p1095_p7)
}
 0x30e   : > { %s1099_s30 = scalar_lea.hbm %s1426_s27, 32  ;;  %s1103_s18 = scalar_lea.hbm %s1473_s3, 64 }
 0x30f   : > { %p1100_p9 = scmp.ne.s32.totalorder %s1426_s27, %s1099_s30  ;;  %p1104_p0 = scmp.lt.u32.totalorder %s1426_s27, %s1473_s3 }
 0x310   : > { %p1105_p11 = scmp.lt.u32.totalorder %s1103_s18, %s1099_s30  ;;  %p1107_p4 = scmp.lt.u32.totalorder %s1099_s30, %s1426_s27 }
 0x311   : > { %p1101_p2 = pnand %p1100_p9, %p1279_p12 }
 0x312   : > { %p1106_p1 = por %p1105_p11, %p1104_p0 }
 0x313   : > { %p1102_p5 = pneg %p1101_p2 }
 0x314   : > { %p1108_p6 = por %p1107_p4, %p1106_p1 }
 0x316   : > { %p1109_p8 = pnand %p1108_p6, %p1102_p5 }
 0x318   : > { %1112 = shalt.err (!%p1109_p8)
}
 0x319   : > { %966 = dma.vmem_to_hbm [thread:$0]  (%p1279_p12), %s1428_s9, 32, %s1426_s27, %s544_s28  }
 0x31a PF: > { %s569_s25 = sand.u32 1, %s1143_s12   ;;  %p1488_p10 = scmp.ne.s32.totalorder %s1478_s19, 0 }
 0x31b   : > { %p1489_p13 = scmp.ge.s32.totalorder %s1155_s15, 2  ;;  %s570_s26 = scalar_lea.sflag [#allocation4], %s569_s25 }
 0x31d   : > { %p977_p3 = pnand %p1489_p13, %p1488_p10 }
 0x31f   : > { %1138 = dma.done.wait (!%p977_p3), %s570_s26, 32  }
 0x320   : > { %1140 = vsyncadd (!%p977_p3), %s570_s26, 4294967264  ;;  %p17_p7 = scmp.ge.s32.totalorder %s1244_s24, 4   ;;  %s1490_s12 = smov %s1147_s13 }
 0x321   : > { %s1491_s13 = smov %s1151_s14  ;;  %s1492_s14 = smov %s1275_s17 }
 0x322   : > { %s1493_s15 = smov %s1244_s24  ;;  %19 = sbr.rel (!%p17_p7) target bundleno = 6 (0x6), region = 81 }
 0x329   :  { %575 = vsyncpa [#allocation3], 1 }
 0x32a   :  { %577 = vsyncpa [#allocation3 + $0x1], 1 }
 0x32b   :  { %578 = vsyncpa [#allocation6], 1 }
 0x32c   :  { %579 = vsyncpa [#allocation4], 1 }
 0x32d   :  { %581 = vsyncpa [#allocation4 + $0x1], 1 }

</bundles_post_ra>
